<compile_context>
chip_gen: v6e
topology: v6e:2x2x1
jax: 0.10.0
libtpu: 0.0.40
codegen_flags: <defaults>
</compile_context>

<pallas_src>
import jax
import jax.numpy as jnp
from jax.experimental import pallas as pl
from jax.experimental.pallas import tpu as pltpu

# Unpadded layer dims (PyTorch Net) and their 128-lane padded counterparts.
DIMS = (784, 300, 100, 50, 10)
PDIMS = (896, 384, 128, 128, 128)
TB_DEFAULT = 256  # batch tile (rows per grid step)


def _round_up(n, m):
    return ((n + m - 1) // m) * m


def mlp_kernel(x_ref, w1_ref, b1_ref, w2_ref, b2_ref, w3_ref, b3_ref,
               w4_ref, b4_ref, o_ref):
    # x_ref: (TB, 896) bf16; w*: (in_pad, out_pad) bf16; b*: (1, out_pad) f32;
    # o_ref: (TB, 128) f32.  All dots accumulate in f32 on the MXU.
    x = x_ref[...]
    h = jnp.dot(x, w1_ref[...], preferred_element_type=jnp.float32) + b1_ref[...]
    h = jnp.maximum(h, 0.0).astype(jnp.bfloat16)
    h = jnp.dot(h, w2_ref[...], preferred_element_type=jnp.float32) + b2_ref[...]
    h = jnp.maximum(h, 0.0).astype(jnp.bfloat16)
    h = jnp.dot(h, w3_ref[...], preferred_element_type=jnp.float32) + b3_ref[...]
    h = jnp.maximum(h, 0.0).astype(jnp.bfloat16)
    o_ref[...] = (jnp.dot(h, w4_ref[...], preferred_element_type=jnp.float32)
                  + b4_ref[...])


def init_params(key):
    """PyTorch nn.Linear default init: U(-1/sqrt(fan_in), +1/sqrt(fan_in)).
    Weights stored pre-transposed as (in_features, out_features) f32."""
    params = []
    for fan_in, fan_out in zip(DIMS[:-1], DIMS[1:]):
        key, kw, kb = jax.random.split(key, 3)
        bound = 1.0 / float(fan_in) ** 0.5
        w = jax.random.uniform(kw, (fan_in, fan_out), jnp.float32, -bound, bound)
        b = jax.random.uniform(kb, (1, fan_out), jnp.float32, -bound, bound)
        params.extend([w, b])
    return tuple(params)


def pad_params(params):
    """Zero-pad feature dims to multiples of 128; weights -> bf16, biases stay
    f32 (bias add / accumulation is done in f32 inside the kernel)."""
    padded = []
    for li, (din, dout, pin, pout) in enumerate(
            zip(DIMS[:-1], DIMS[1:], PDIMS[:-1], PDIMS[1:])):
        w, b = params[2 * li], params[2 * li + 1]
        wp = jnp.zeros((pin, pout), jnp.float32).at[:din, :dout].set(w)
        bp = jnp.zeros((1, pout), jnp.float32).at[:, :dout].set(b)
        padded.extend([wp.astype(jnp.bfloat16), bp])
    return tuple(padded)


@jax.jit
def net_forward(x, padded_params):
    """Forward pass equivalent to Net.forward (x.view(-1, 784) -> 4 Linears)."""
    B = x.shape[0]
    x2 = x.reshape(B, DIMS[0]).astype(jnp.float32)
    # Pad features 784 -> 896 and cast the HBM activation stream to bf16.
    x2 = jnp.pad(x2, ((0, 0), (0, PDIMS[0] - DIMS[0]))).astype(jnp.bfloat16)
    # Pad the batch up to a multiple of the batch tile (>= 8 sublanes).
    tb = min(TB_DEFAULT, _round_up(max(B, 8), 8))
    b_pad = _round_up(B, tb)
    if b_pad != B:
        x2 = jnp.pad(x2, ((0, b_pad - B), (0, 0)))

    grid = (b_pad // tb,)
    x_spec = pl.BlockSpec((tb, PDIMS[0]), lambda i: (i, 0))
    out_spec = pl.BlockSpec((tb, PDIMS[-1]), lambda i: (i, 0))
    # Weights/biases: constant index_map -> same block every step (resident).
    param_specs = []
    for pin, pout in zip(PDIMS[:-1], PDIMS[1:]):
        param_specs.append(pl.BlockSpec((pin, pout), lambda i: (0, 0)))
        param_specs.append(pl.BlockSpec((1, pout), lambda i: (0, 0)))

    out_padded = pl.pallas_call(
        mlp_kernel,
        out_shape=jax.ShapeDtypeStruct((b_pad, PDIMS[-1]), jnp.float32),
        grid=grid,
        in_specs=[x_spec] + param_specs,
        out_specs=out_spec,
        compiler_params=pltpu.CompilerParams(
            dimension_semantics=("parallel",),      # megacore on v7x
            vmem_limit_bytes=32 * 1024 * 1024,      # explicit, lots of headroom
        ),
    )(x2, *padded_params)
    # Slice padded batch rows and the 128-wide padded output back to (B, 10).
    return out_padded[:B, :DIMS[-1]]


def net_reference(x, params):
    """Pure-JAX f32 reference with the unpadded parameters."""
    B = x.shape[0]
    h = x.reshape(B, 28 * 28).astype(jnp.float32)
    w1, b1, w2, b2, w3, b3, w4, b4 = params
    h = jnp.maximum(h @ w1 + b1, 0.0)
    h = jnp.maximum(h @ w2 + b2, 0.0)
    h = jnp.maximum(h @ w3 + b3, 0.0)
    return h @ w4 + b4


if __name__ == "__main__":
    key = jax.random.PRNGKey(0)
    key_x, key_x2, key_p = jax.random.split(key, 3)
    params = init_params(key_p)
    pparams = pad_params(params)

    # Small MNIST-like batch, NCHW, as the torch module receives.
    x_small = jax.random.normal(key_x, (2, 1, 28, 28), dtype=jnp.float32)
    out_small = jax.block_until_ready(net_forward(x_small, pparams))
    ref_small = net_reference(x_small, params)
    assert out_small.shape == (2, 10)
    assert jnp.allclose(out_small, ref_small, atol=5e-2, rtol=5e-2), \
        "mismatch vs reference (small batch)"

    # A batch that exercises the batch grid (multiple TB=256 tiles + padding).
    x_big = jax.random.normal(key_x2, (300, 1, 28, 28), dtype=jnp.float32)
    out_big = jax.block_until_ready(net_forward(x_big, pparams))
    ref_big = net_reference(x_big, params)
    assert out_big.shape == (300, 10)
    assert jnp.allclose(out_big, ref_big, atol=5e-2, rtol=5e-2), \
        "mismatch vs reference (tiled batch)"

    print("KERNEL_OK")
</pallas_src>

<mosaic_0001>
module attributes {stable_mosaic.version = 11 : i64} {
  func.func @mlp_kernel(%arg0: i32, %arg1: memref<8x896xbf16, #tpu.memory_space<vmem>>, %arg2: memref<896x384xbf16, #tpu.memory_space<vmem>>, %arg3: memref<1x384xf32, #tpu.memory_space<vmem>>, %arg4: memref<384x128xbf16, #tpu.memory_space<vmem>>, %arg5: memref<1x128xf32, #tpu.memory_space<vmem>>, %arg6: memref<128x128xbf16, #tpu.memory_space<vmem>>, %arg7: memref<1x128xf32, #tpu.memory_space<vmem>>, %arg8: memref<128x128xbf16, #tpu.memory_space<vmem>>, %arg9: memref<1x128xf32, #tpu.memory_space<vmem>>, %arg10: memref<8x128xf32, #tpu.memory_space<vmem>>) attributes {dimension_semantics = [#tpu.dimension_semantics<parallel>], iteration_bounds = array<i64: 1>, scalar_prefetch = 0 : i64, scratch_operands = 0 : i64, tpu.core_type = #tpu.core_type<tc>, window_params = [{transform_indices = @transform_0, window_bounds = array<i64: 8, 896>}, {pipeline_mode = #tpu.pipeline_mode<synchronous>, transform_indices = @transform_1, window_bounds = array<i64: 896, 384>}, {pipeline_mode = #tpu.pipeline_mode<synchronous>, transform_indices = @transform_2, window_bounds = array<i64: 1, 384>}, {pipeline_mode = #tpu.pipeline_mode<synchronous>, transform_indices = @transform_3, window_bounds = array<i64: 384, 128>}, {pipeline_mode = #tpu.pipeline_mode<synchronous>, transform_indices = @transform_4, window_bounds = array<i64: 1, 128>}, {pipeline_mode = #tpu.pipeline_mode<synchronous>, transform_indices = @transform_5, window_bounds = array<i64: 128, 128>}, {pipeline_mode = #tpu.pipeline_mode<synchronous>, transform_indices = @transform_6, window_bounds = array<i64: 1, 128>}, {pipeline_mode = #tpu.pipeline_mode<synchronous>, transform_indices = @transform_7, window_bounds = array<i64: 128, 128>}, {pipeline_mode = #tpu.pipeline_mode<synchronous>, transform_indices = @transform_8, window_bounds = array<i64: 1, 128>}, {transform_indices = @transform_9, window_bounds = array<i64: 8, 128>}]} {
    %c0 = arith.constant 0 : index
    %c0_0 = arith.constant 0 : index
    %0 = vector.load %arg1[%c0, %c0_0] : memref<8x896xbf16, #tpu.memory_space<vmem>>, vector<8x896xbf16>
    %c0_1 = arith.constant 0 : index
    %c0_2 = arith.constant 0 : index
    %1 = vector.load %arg2[%c0_1, %c0_2] : memref<896x384xbf16, #tpu.memory_space<vmem>>, vector<896x384xbf16>
    %cst = arith.constant dense<0.000000e+00> : vector<8x384xf32>
    %2 = tpu.matmul %0, %1, %cst {dimension_numbers = #tpu.dot_dimension_numbers<[1], [0], [0], [1], [0, 0, 1, 1], [], []>} : vector<8x896xbf16>, vector<896x384xbf16>, vector<8x384xf32> -> vector<8x384xf32>
    %c0_3 = arith.constant 0 : index
    %c0_4 = arith.constant 0 : index
    %3 = vector.load %arg3[%c0_3, %c0_4] : memref<1x384xf32, #tpu.memory_space<vmem>>, vector<1x384xf32>
    %4 = vector.broadcast %3 : vector<1x384xf32> to vector<8x384xf32>
    %5 = arith.addf %2, %4 : vector<8x384xf32>
    %cst_5 = arith.constant 0.000000e+00 : f32
    %6 = vector.broadcast %cst_5 : f32 to vector<8x384xf32>
    %7 = arith.maximumf %5, %6 : vector<8x384xf32>
    %8 = arith.truncf %7 : vector<8x384xf32> to vector<8x384xbf16>
    %c0_6 = arith.constant 0 : index
    %c0_7 = arith.constant 0 : index
    %9 = vector.load %arg4[%c0_6, %c0_7] : memref<384x128xbf16, #tpu.memory_space<vmem>>, vector<384x128xbf16>
    %cst_8 = arith.constant dense<0.000000e+00> : vector<8x128xf32>
    %10 = tpu.matmul %8, %9, %cst_8 {dimension_numbers = #tpu.dot_dimension_numbers<[1], [0], [0], [1], [0, 0, 1, 1], [], []>} : vector<8x384xbf16>, vector<384x128xbf16>, vector<8x128xf32> -> vector<8x128xf32>
    %c0_9 = arith.constant 0 : index
    %c0_10 = arith.constant 0 : index
    %11 = vector.load %arg5[%c0_9, %c0_10] : memref<1x128xf32, #tpu.memory_space<vmem>>, vector<1x128xf32>
    %12 = vector.broadcast %11 : vector<1x128xf32> to vector<8x128xf32>
    %13 = arith.addf %10, %12 : vector<8x128xf32>
    %cst_11 = arith.constant 0.000000e+00 : f32
    %14 = vector.broadcast %cst_11 : f32 to vector<8x128xf32>
    %15 = arith.maximumf %13, %14 : vector<8x128xf32>
    %16 = arith.truncf %15 : vector<8x128xf32> to vector<8x128xbf16>
    %c0_12 = arith.constant 0 : index
    %c0_13 = arith.constant 0 : index
    %17 = vector.load %arg6[%c0_12, %c0_13] : memref<128x128xbf16, #tpu.memory_space<vmem>>, vector<128x128xbf16>
    %cst_14 = arith.constant dense<0.000000e+00> : vector<8x128xf32>
    %18 = tpu.matmul %16, %17, %cst_14 {dimension_numbers = #tpu.dot_dimension_numbers<[1], [0], [0], [1], [0, 0, 1, 1], [], []>} : vector<8x128xbf16>, vector<128x128xbf16>, vector<8x128xf32> -> vector<8x128xf32>
    %c0_15 = arith.constant 0 : index
    %c0_16 = arith.constant 0 : index
    %19 = vector.load %arg7[%c0_15, %c0_16] : memref<1x128xf32, #tpu.memory_space<vmem>>, vector<1x128xf32>
    %20 = vector.broadcast %19 : vector<1x128xf32> to vector<8x128xf32>
    %21 = arith.addf %18, %20 : vector<8x128xf32>
    %cst_17 = arith.constant 0.000000e+00 : f32
    %22 = vector.broadcast %cst_17 : f32 to vector<8x128xf32>
    %23 = arith.maximumf %21, %22 : vector<8x128xf32>
    %24 = arith.truncf %23 : vector<8x128xf32> to vector<8x128xbf16>
    %c0_18 = arith.constant 0 : index
    %c0_19 = arith.constant 0 : index
    %25 = vector.load %arg8[%c0_18, %c0_19] : memref<128x128xbf16, #tpu.memory_space<vmem>>, vector<128x128xbf16>
    %cst_20 = arith.constant dense<0.000000e+00> : vector<8x128xf32>
    %26 = tpu.matmul %24, %25, %cst_20 {dimension_numbers = #tpu.dot_dimension_numbers<[1], [0], [0], [1], [0, 0, 1, 1], [], []>} : vector<8x128xbf16>, vector<128x128xbf16>, vector<8x128xf32> -> vector<8x128xf32>
    %c0_21 = arith.constant 0 : index
    %c0_22 = arith.constant 0 : index
    %27 = vector.load %arg9[%c0_21, %c0_22] : memref<1x128xf32, #tpu.memory_space<vmem>>, vector<1x128xf32>
    %28 = vector.broadcast %27 : vector<1x128xf32> to vector<8x128xf32>
    %29 = arith.addf %26, %28 : vector<8x128xf32>
    %c0_23 = arith.constant 0 : index
    %c0_24 = arith.constant 0 : index
    %30 = vector.load %arg10[%c0_23, %c0_24] : memref<8x128xf32, #tpu.memory_space<vmem>>, vector<8x128xf32>
    tpu.vector_store %arg10[%c0_23, %c0_24], %29 {strides = array<i32>} : memref<8x128xf32, #tpu.memory_space<vmem>>, vector<8x128xf32>,
    return
  }
  func.func @transform_0(%arg0: i32) -> (i32, i32) {
    %c0_i32 = arith.constant 0 : i32
    %c0_i32_0 = arith.constant 0 : i32
    return %arg0, %c0_i32 : i32, i32
  }
  func.func @transform_1(%arg0: i32) -> (i32, i32) {
    %c0_i32 = arith.constant 0 : i32
    %c0_i32_0 = arith.constant 0 : i32
    %c0_i32_1 = arith.constant 0 : i32
    return %c0_i32, %c0_i32_0 : i32, i32
  }
  func.func @transform_2(%arg0: i32) -> (i32, i32) {
    %c0_i32 = arith.constant 0 : i32
    %c0_i32_0 = arith.constant 0 : i32
    %c0_i32_1 = arith.constant 0 : i32
    return %c0_i32, %c0_i32_0 : i32, i32
  }
  func.func @transform_3(%arg0: i32) -> (i32, i32) {
    %c0_i32 = arith.constant 0 : i32
    %c0_i32_0 = arith.constant 0 : i32
    %c0_i32_1 = arith.constant 0 : i32
    return %c0_i32, %c0_i32_0 : i32, i32
  }
  func.func @transform_4(%arg0: i32) -> (i32, i32) {
    %c0_i32 = arith.constant 0 : i32
    %c0_i32_0 = arith.constant 0 : i32
    %c0_i32_1 = arith.constant 0 : i32
    return %c0_i32, %c0_i32_0 : i32, i32
  }
  func.func @transform_5(%arg0: i32) -> (i32, i32) {
    %c0_i32 = arith.constant 0 : i32
    %c0_i32_0 = arith.constant 0 : i32
    %c0_i32_1 = arith.constant 0 : i32
    return %c0_i32, %c0_i32_0 : i32, i32
  }
  func.func @transform_6(%arg0: i32) -> (i32, i32) {
    %c0_i32 = arith.constant 0 : i32
    %c0_i32_0 = arith.constant 0 : i32
    %c0_i32_1 = arith.constant 0 : i32
    return %c0_i32, %c0_i32_0 : i32, i32
  }
  func.func @transform_7(%arg0: i32) -> (i32, i32) {
    %c0_i32 = arith.constant 0 : i32
    %c0_i32_0 = arith.constant 0 : i32
    %c0_i32_1 = arith.constant 0 : i32
    return %c0_i32, %c0_i32_0 : i32, i32
  }
  func.func @transform_8(%arg0: i32) -> (i32, i32) {
    %c0_i32 = arith.constant 0 : i32
    %c0_i32_0 = arith.constant 0 : i32
    %c0_i32_1 = arith.constant 0 : i32
    return %c0_i32, %c0_i32_0 : i32, i32
  }
  func.func @transform_9(%arg0: i32) -> (i32, i32) {
    %c0_i32 = arith.constant 0 : i32
    %c0_i32_0 = arith.constant 0 : i32
    return %arg0, %c0_i32 : i32, i32
  }
}

</mosaic_0001>

<bundles_post_ra>
// kernel: net_forward.1
= control target key start
LH: loop header
LB: loop body
LE: loop exit
PB: predicated region body
PF: predicated region fallthrough
CT: control target
= control target key end

     0   :  { %14 = vsyncpa [#allocation3], 0  ;;  %s3029_s0 = inlined_call_operand.vmem [shape: bf16[8,896], index: 0, kind: input, shape index: {}]   ;;  %s3030_s1 = inlined_call_operand.hbm [shape: bf16[896,384], index: 1, kind: input, shape index: {}]   ;;  %s3031_s2 = inlined_call_operand.vmem [shape: f32[1,384], index: 2, kind: input, shape index: {}]   ;;  %s3032_s3 = inlined_call_operand.hbm [shape: bf16[384,128], index: 3, kind: input, shape index: {}]   ;;  %s3033_s4 = inlined_call_operand.vmem [shape: f32[1,128], index: 4, kind: input, shape index: {}]   ;;  %s3034_s5 = inlined_call_operand.vmem [shape: bf16[128,128], index: 5, kind: input, shape index: {}]   ;;  %s3035_s6 = inlined_call_operand.vmem [shape: f32[1,128], index: 6, kind: input, shape index: {}]   ;;  %s3036_s7 = inlined_call_operand.vmem [shape: bf16[128,128], index: 7, kind: input, shape index: {}]   ;;  %s3037_s8 = inlined_call_operand.vmem [shape: f32[1,128], index: 8, kind: input, shape index: {}]   ;;  %s3038_s9 = inlined_call_operand.vmem [shape: f32[8,128], index: 9, kind: output, shape index: {}]  }
   0x1   :  { %15 = vsyncpa [#allocation5], 0  ;;  %s2815_s30 = smov [#allocation2]  }
   0x2   :  { %s23_s10 = sshll.u32 %s2815_s30, 4  ;;  %s24_s10 = int_to_ptr.vmem [resolvable:$true] %s23_s10 }
   0x3   :  { %s2779_s11 = scalar_lea.vmem %s24_s10, 21504  ;;  %p2784_p1 = scmp.lt.s32.totalorder %s24_s10, %s24_s10 }
   0x4   :  { %p2780_p0 = scmp.ne.s32.totalorder %s24_s10, %s2779_s11  ;;  %p2785_p2 = scmp.lt.s32.totalorder %s2779_s11, %s2779_s11 }
   0x6   :  { %p2786_p3 = por %p2785_p2, %p2784_p1 }
   0x8   :  { %p2787_p4 = pnand %p2786_p3, %p2780_p0 }
   0xa   :  { %2790 = shalt.err (!%p2787_p4)
}
   0xb   :  { %s2816_s12 = smov 192   ;;  %s2817_s13 = smov 12  }
   0xc   :  { %29 = dma.hbm_to_vmem [thread:$0]  %s3030_s1, 21504, %s24_s10, [#allocation3], %s2816_s12, %s2816_s12, %s2817_s13  }
   0xd   :  { %s2818_s16 = smov [#allocation4]  }
   0xe   :  { %s37_s17 = sshll.u32 %s2818_s16, 4  ;;  %s38_s17 = int_to_ptr.vmem [resolvable:$true] %s37_s17 }
   0xf   :  { %s2799_s18 = scalar_lea.vmem %s38_s17, 3072  ;;  %p2804_p6 = scmp.lt.s32.totalorder %s38_s17, %s38_s17 }
  0x10   :  { %p2800_p5 = scmp.ne.s32.totalorder %s38_s17, %s2799_s18  ;;  %p2805_p7 = scmp.lt.s32.totalorder %s2799_s18, %s2799_s18 }
  0x12   :  { %p2806_p8 = por %p2805_p7, %p2804_p6 }
  0x14   :  { %p2807_p9 = pnand %p2806_p8, %p2800_p5 }
  0x16   :  { %2810 = shalt.err (!%p2807_p9)
}
  0x17   :  { %s2819_s19 = smov 64   ;;  %s2820_s20 = smov 4  }
  0x18   :  { %43 = dma.hbm_to_vmem [thread:$0]  %s3032_s3, 3072, %s38_s17, [#allocation5], %s2819_s19, %s2819_s19, %s2820_s20  }
  0x19   :  { %2811 = dma.done.wait [#allocation3], 21504  }
  0x1a   :  { %2812 = vsyncadd [#allocation3], 4294945792 }
  0x1b   :  { %2813 = dma.done.wait [#allocation5], 3072  }
  0x1c   :  { %2814 = vsyncadd [#allocation5], 4294964224  ;;  %v2500_v0 = vld [vmem:[#allocation2 + $0xac] ss:$12 sps:$4 sm:$0xff]   ;;  %v2502_v1 = vld [vmem:[#allocation2 + $0xa8] ss:$12 sps:$4 sm:$0xff]  }
  0x1d   :  { %1227 = vmatprep.subr.bf16.mxu0 %v2500_v0  ;;  %v2503_v2 = vld [vmem:[#allocation2 + $0x22c] ss:$12 sps:$4 sm:$0xff]   ;;  %v2505_v3 = vld [vmem:[#allocation2 + $0x228] ss:$12 sps:$4 sm:$0xff]   ;;  %v2508_v5 = vld [vmem:[#allocation2 + $0x90] ss:$12 sps:$4 sm:$0xff]  }
  0x1e   :  { %1228 = vmatpush1.bf16.msra.mxu0 %v2502_v1  ;;  %v2506_v4 = vld [vmem:[#allocation2 + $0x94] ss:$12 sps:$4 sm:$0xff]   ;;  %1268 = vmatprep.subr.bf16.mxu1 %v2503_v2  ;;  %v2511_v7 = vld [vmem:[#allocation2 + $0x210] ss:$12 sps:$4 sm:$0xff]   ;;  %v2514_v9 = vld [vmem:[#allocation2 + $0x78] ss:$12 sps:$4 sm:$0xff]  }
  0x1f   :  { %v2509_v6 = vld [vmem:[#allocation2 + $0x214] ss:$12 sps:$4 sm:$0xff]   ;;  %1269 = vmatpush1.bf16.msra.mxu1 %v2505_v3  ;;  %1229 = vmatprep.subr.bf16.mxu0 %v2506_v4  ;;  %v2512_v8 = vld [vmem:[#allocation2 + $0x7c] ss:$12 sps:$4 sm:$0xff]   ;;  %v2518_v11 = vld [vmem:[#allocation2 + $0x64] ss:$12 sps:$4 sm:$0xff]  }
  0x20   :  { %1270 = vmatprep.subr.bf16.mxu1 %v2509_v6  ;;  %v2515_v10 = vld [vmem:[#allocation2 + $0x1fc] ss:$12 sps:$4 sm:$0xff]   ;;  %v2517_v12 = vld [vmem:[#allocation2 + $0x1f8] ss:$12 sps:$4 sm:$0xff]   ;;  %v2520_v14 = vld [vmem:[#allocation2 + $0x60] ss:$12 sps:$4 sm:$0xff]  }
  0x21   :  { %v2521_v13 = vld [vmem:[#allocation2 + $0x1e4] ss:$12 sps:$4 sm:$0xff]   ;;  %v2524_v15 = vld [vmem:[#allocation2 + $0x4c] ss:$12 sps:$4 sm:$0xff]   ;;  %v2526_v18 = vld [vmem:[#allocation2 + $0x48] ss:$12 sps:$4 sm:$0xff]  }
  0x22   :  { %1230 = vmatpush1.bf16.msra.mxu0 %v2508_v5  ;;  %v2523_v16 = vld [vmem:[#allocation2 + $0x1e0] ss:$12 sps:$4 sm:$0xff]   ;;  %v2529_v20 = vld [vmem:[#allocation2 + $0x1c8] ss:$12 sps:$4 sm:$0xff]   ;;  %v2532_v22 = vld [vmem:[#allocation2 + $0x30] ss:$12 sps:$4 sm:$0xff]  }
  0x23   :  { %1231 = vmatprep.subr.bf16.mxu0 %v2512_v8  ;;  %1271 = vmatpush1.bf16.msra.mxu1 %v2511_v7  ;;  %v2527_v17 = vld [vmem:[#allocation2 + $0x1cc] ss:$12 sps:$4 sm:$0xff]   ;;  %v2530_v19 = vld [vmem:[#allocation2 + $0x34] ss:$12 sps:$4 sm:$0xff]   ;;  %v2536_v23 = vld [vmem:[#allocation2 + $0x1c] ss:$12 sps:$4 sm:$0xff]  }
  0x24   :  { %1272 = vmatprep.subr.bf16.mxu1 %v2515_v10  ;;  %v2533_v21 = vld [vmem:[#allocation2 + $0x1b4] ss:$12 sps:$4 sm:$0xff]   ;;  %v2535_v24 = vld [vmem:[#allocation2 + $0x1b0] ss:$12 sps:$4 sm:$0xff]   ;;  %v2538_v26 = vld [vmem:[#allocation2 + $0x18] ss:$12 sps:$4 sm:$0xff]  }
  0x25   :  { %v2539_v25 = vld [vmem:[#allocation2 + $0x19c] ss:$12 sps:$4 sm:$0xff]   ;;  %v2542_v27 = vld [vmem:[#allocation2 + $0x4] ss:$12 sps:$4 sm:$0xff]   ;;  %v2544_v30 = vld [vmem:[#allocation2] ss:$12 sps:$4 sm:$0xff]  }
  0x26   :  { %1232 = vmatpush1.bf16.msra.mxu0 %v2514_v9  ;;  %v2541_v28 = vld [vmem:[#allocation2 + $0x198] ss:$12 sps:$4 sm:$0xff]   ;;  %v2547_v32 = vld [vmem:[#allocation2 + $0x180] ss:$12 sps:$4 sm:$0xff]   ;;  %v2550_v34 = vld [vmem:[#allocation2 + $0x168] ss:$12 sps:$4 sm:$0xff]  }
  0x27   :  { %1233 = vmatprep.subr.bf16.mxu0 %v2518_v11  ;;  %1273 = vmatpush1.bf16.msra.mxu1 %v2517_v12  ;;  %v2545_v29 = vld [vmem:[#allocation2 + $0x184] ss:$12 sps:$4 sm:$0xff]   ;;  %v2548_v31 = vld [vmem:[#allocation2 + $0x16c] ss:$12 sps:$4 sm:$0xff]   ;;  %v2554_v35 = vld [vmem:[#allocation2 + $0x154] ss:$12 sps:$4 sm:$0xff]  }
  0x28   :  { %1274 = vmatprep.subr.bf16.mxu1 %v2521_v13  ;;  %v2551_v33 = vld [vmem:[#allocation2 + $0x2ec] ss:$12 sps:$4 sm:$0xff]   ;;  %v2553_v36 = vld [vmem:[#allocation2 + $0x2e8] ss:$12 sps:$4 sm:$0xff]   ;;  %v2556_v38 = vld [vmem:[#allocation2 + $0x150] ss:$12 sps:$4 sm:$0xff]  }
  0x29   :  { %v2557_v37 = vld [vmem:[#allocation2 + $0x2d4] ss:$12 sps:$4 sm:$0xff]   ;;  %v2560_v39 = vld [vmem:[#allocation2 + $0x13c] ss:$12 sps:$4 sm:$0xff]   ;;  %v2562_v42 = vld [vmem:[#allocation2 + $0x138] ss:$12 sps:$4 sm:$0xff]  }
  0x2a   :  { %1234 = vmatpush1.bf16.msra.mxu0 %v2520_v14  ;;  %v2559_v40 = vld [vmem:[#allocation2 + $0x2d0] ss:$12 sps:$4 sm:$0xff]   ;;  %v2565_v44 = vld [vmem:[#allocation2 + $0x2b8] ss:$12 sps:$4 sm:$0xff]   ;;  %v2568_v47 = vld [vmem:[#allocation2 + $0x120] ss:$12 sps:$4 sm:$0xff]  }
  0x2b   :  { %1235 = vmatprep.subr.bf16.mxu0 %v2524_v15  ;;  %1275 = vmatpush1.bf16.msra.mxu1 %v2523_v16  ;;  %v2563_v41 = vld [vmem:[#allocation2 + $0x2bc] ss:$12 sps:$4 sm:$0xff]   ;;  %v2566_v43 = vld [vmem:[#allocation2 + $0x124] ss:$12 sps:$4 sm:$0xff]   ;;  %v2572_v49 = vld [vmem:[#allocation2 + $0x10c] ss:$12 sps:$4 sm:$0xff]  }
  0x2c   :  { %1276 = vmatprep.subr.bf16.mxu1 %v2527_v17  ;;  %v2569_v45 = vld [vmem:[#allocation2 + $0x2a4] ss:$12 sps:$4 sm:$0xff]   ;;  %v62_v50 = vld [vmem:[%s3029_s0 + $0x8] sm:$0xff]  ;;  %v2578_v55 = vld [vmem:[#allocation2 + $0xf4] ss:$12 sps:$4 sm:$0xff]   ;;  %v2821_v15 = vmov 0  }
  0x2d   :  { %v61_v46 = vld [vmem:[%s3029_s0] sm:$0xff]  ;;  %v2889_v52 = vcombine.high %v62_v50, %v62_v50  ;;  %v2575_v53 = vld [vmem:[#allocation2 + $0x28c] ss:$12 sps:$4 sm:$0xff]   ;;  %v2574_v54 = vld [vmem:[#allocation2 + $0x108] ss:$12 sps:$4 sm:$0xff]   ;;  %v2894_v8 = vcombine.low %v62_v50, %v62_v50  ;;  %vm2823_vm0 = vmmov 0  }
  0x2e   :  { %1236 = vmatpush1.bf16.msra.mxu0 %v2526_v18  ;;  %v2883_v48 = vcombine.high %v61_v46, %v61_v46  ;;  %v2571_v51 = vld [vmem:[#allocation2 + $0x2a0] ss:$12 sps:$4 sm:$0xff]   ;;  %v2577_v56 = vld [vmem:[#allocation2 + $0x288] ss:$12 sps:$4 sm:$0xff]   ;;  %v2580_v58 = vld [vmem:[#allocation2 + $0xf0] ss:$12 sps:$4 sm:$0xff]   ;;  %v2892_v5 = vcombine.low %v61_v46, %v61_v46 }
  0x2f   :  { %1237 = vmatprep.subr.bf16.mxu0 %v2530_v19  ;;  %1277 = vmatpush1.bf16.msra.mxu1 %v2529_v20  ;;  %v2581_v57 = vld [vmem:[#allocation2 + $0x274] ss:$12 sps:$4 sm:$0xff]   ;;  %v2584_v59 = vld [vmem:[#allocation2 + $0xdc] ss:$12 sps:$4 sm:$0xff]   ;;  %v2586_v62 = vld [vmem:[#allocation2 + $0xd8] ss:$12 sps:$4 sm:$0xff]  }
  0x30   :  { %1278 = vmatprep.subr.bf16.mxu1 %v2533_v21  ;;  %1259 = vmatprep.mubr.bf16.mxu0 %v2883_v48  ;;  %v2583_v60 = vld [vmem:[#allocation2 + $0x270] ss:$12 sps:$4 sm:$0xff]   ;;  %v2589_v0 = vld [vmem:[#allocation2 + $0x258] ss:$12 sps:$4 sm:$0xff]   ;;  %v2592_v2 = vld [vmem:[#allocation2 + $0xc0] ss:$12 sps:$4 sm:$0xff]  }
  0x31   :  { %1300 = vmatprep.mubr.bf16.mxu1 %v2889_v52  ;;  %v2587_v61 = vld [vmem:[#allocation2 + $0x25c] ss:$12 sps:$4 sm:$0xff]   ;;  %v2590_v63 = vld [vmem:[#allocation2 + $0xc4] ss:$12 sps:$4 sm:$0xff]   ;;  %v2600_v3 = vld [vmem:[#allocation2 + $0x3ac] ss:$12 sps:$4 sm:$0xff]  }
  0x32   :  { %1238 = vmatpush1.bf16.msra.mxu0 %v2532_v22  ;;  %v2593_v1 = vld [vmem:[#allocation2 + $0x244] ss:$12 sps:$4 sm:$0xff]   ;;  %v2597_v4 = vld [vmem:[#allocation2 + $0x240] ss:$12 sps:$4 sm:$0xff]   ;;  %v2598_v7 = vld [vmem:[#allocation2 + $0x3a8] ss:$12 sps:$4 sm:$0xff]  }
  0x33   :  { %1239 = vmatprep.subr.bf16.mxu0 %v2536_v23  ;;  %1279 = vmatpush1.bf16.msra.mxu1 %v2535_v24  ;;  %v2605_v6 = vld [vmem:[#allocation2 + $0x52c] ss:$12 sps:$4 sm:$0xff]   ;;  %v2608_v9 = vld [vmem:[#allocation2 + $0x394] ss:$12 sps:$4 sm:$0xff]   ;;  %v2606_v12 = vld [vmem:[#allocation2 + $0x390] ss:$12 sps:$4 sm:$0xff]  }
  0x34   :  { %1280 = vmatprep.subr.bf16.mxu1 %v2539_v25  ;;  %v2603_v10 = vld [vmem:[#allocation2 + $0x528] ss:$12 sps:$4 sm:$0xff]   ;;  %v2609_v14 = vld [vmem:[#allocation2 + $0x510] ss:$12 sps:$4 sm:$0xff]   ;;  %v2612_v17 = vld [vmem:[#allocation2 + $0x378] ss:$12 sps:$4 sm:$0xff]  }
  0x35   :  { %v2611_v11 = vld [vmem:[#allocation2 + $0x514] ss:$12 sps:$4 sm:$0xff]   ;;  %v2614_v13 = vld [vmem:[#allocation2 + $0x37c] ss:$12 sps:$4 sm:$0xff]   ;;  %v2620_v18 = vld [vmem:[#allocation2 + $0x364] ss:$12 sps:$4 sm:$0xff]  }
  0x36   :  { %1240 = vmatpush1.bf16.msra.mxu0 %v2538_v26  ;;  %v2617_v16 = vld [vmem:[#allocation2 + $0x4fc] ss:$12 sps:$4 sm:$0xff]   ;;  %v2615_v19 = vld [vmem:[#allocation2 + $0x4f8] ss:$12 sps:$4 sm:$0xff]   ;;  %v2618_v21 = vld [vmem:[#allocation2 + $0x360] ss:$12 sps:$4 sm:$0xff]  }
  0x37   :  { %1241 = vmatprep.subr.bf16.mxu0 %v2542_v27  ;;  %1281 = vmatpush1.bf16.msra.mxu1 %v2541_v28  ;;  %v2623_v20 = vld [vmem:[#allocation2 + $0x4e4] ss:$12 sps:$4 sm:$0xff]   ;;  %v2626_v22 = vld [vmem:[#allocation2 + $0x34c] ss:$12 sps:$4 sm:$0xff]   ;;  %v2624_v25 = vld [vmem:[#allocation2 + $0x348] ss:$12 sps:$4 sm:$0xff]  }
  0x38   :  { %1282 = vmatprep.subr.bf16.mxu1 %v2545_v29  ;;  %v2621_v23 = vld [vmem:[#allocation2 + $0x4e0] ss:$12 sps:$4 sm:$0xff]   ;;  %v2627_v27 = vld [vmem:[#allocation2 + $0x4c8] ss:$12 sps:$4 sm:$0xff]   ;;  %v2630_v29 = vld [vmem:[#allocation2 + $0x330] ss:$12 sps:$4 sm:$0xff]  }
  0x39   :  { %v2629_v24 = vld [vmem:[#allocation2 + $0x4cc] ss:$12 sps:$4 sm:$0xff]   ;;  %v2632_v26 = vld [vmem:[#allocation2 + $0x334] ss:$12 sps:$4 sm:$0xff]   ;;  %v2653_v46 = vld [vmem:[#allocation2 + $0xb0] ss:$12 sps:$4 sm:$0xff]  }
  0x3a   :  { %1242 = vmatpush1.bf16.msra.mxu0 %v2544_v30  ;;  %v2635_v28 = vld [vmem:[#allocation2 + $0x4b4] ss:$12 sps:$4 sm:$0xff]   ;;  %v2638_v30 = vld [vmem:[#allocation2 + $0x31c] ss:$12 sps:$4 sm:$0xff]  }
  0x3b   :  { %1243 = vmatprep.subr.bf16.mxu0 %v2548_v31  ;;  %1283 = vmatpush1.bf16.msra.mxu1 %v2547_v32  ;;  %v2633_v31 = vld [vmem:[#allocation2 + $0x4b0] ss:$12 sps:$4 sm:$0xff]  }
  0x3c   :  { %1284 = vmatprep.subr.bf16.mxu1 %v2551_v33  ;;  %v2641_v32 = vld [vmem:[#allocation2 + $0x49c] ss:$12 sps:$4 sm:$0xff]   ;;  %v2636_v33 = vld [vmem:[#allocation2 + $0x318] ss:$12 sps:$4 sm:$0xff]  }
  0x3d   :  { %v2661_v50 = vld [vmem:[#allocation2 + $0x43c] ss:$12 sps:$4 sm:$0xff]  }
  0x3e   :  { %1244 = vmatpush2.bf16.msra.mxu0 %v2550_v34  ;;  %v2644_v34 = vld [vmem:[#allocation2 + $0x304] ss:$12 sps:$4 sm:$0xff]  }
  0x3f   :  { %1245 = vmatprep.subr.bf16.mxu0 %v2554_v35  ;;  %1285 = vmatpush2.bf16.msra.mxu1 %v2553_v36  ;;  %v2639_v35 = vld [vmem:[#allocation2 + $0x498] ss:$12 sps:$4 sm:$0xff]   ;;  %v2642_v36 = vld [vmem:[#allocation2 + $0x300] ss:$12 sps:$4 sm:$0xff]  }
  0x40   :  { %1286 = vmatprep.subr.bf16.mxu1 %v2557_v37  ;;  %v2647_v37 = vld [vmem:[#allocation2 + $0x484] ss:$12 sps:$4 sm:$0xff]  }
  0x42   :  { %1246 = vmatpush2.bf16.msra.mxu0 %v2556_v38  ;;  %v2645_v38 = vld [vmem:[#allocation2 + $0x480] ss:$12 sps:$4 sm:$0xff]  }
  0x43   :  { %1247 = vmatprep.subr.bf16.mxu0 %v2560_v39  ;;  %1287 = vmatpush2.bf16.msra.mxu1 %v2559_v40  ;;  %v2901_v39 = vld [vmem:[%s3029_s0 + $0x10] sm:$0xff]  ;;  %v2650_v40 = vld [vmem:[#allocation2 + $0x46c] ss:$12 sps:$4 sm:$0xff]  }
  0x44   :  { %1288 = vmatprep.subr.bf16.mxu1 %v2563_v41  ;;  %v2905_v41 = vcombine.high %v2901_v39, %v2901_v39 }
  0x46   :  { %1248 = vmatpush2.bf16.msra.mxu0 %v2562_v42  ;;  %v2648_v42 = vld [vmem:[#allocation2 + $0x468] ss:$12 sps:$4 sm:$0xff]  }
  0x47   :  { %1249 = vmatprep.subr.bf16.mxu0 %v2566_v43  ;;  %1289 = vmatpush2.bf16.msra.mxu1 %v2565_v44  ;;  %v2651_v43 = vld [vmem:[#allocation2 + $0x170] ss:$12 sps:$4 sm:$0xff]   ;;  %v2911_v44 = vld [vmem:[%s3029_s0 + $0x18] ss:$0 sps:$4 sm:$0xff]  }
  0x48   :  { %1290 = vmatprep.subr.bf16.mxu1 %v2569_v45  ;;  %v2656_v45 = vld [vmem:[#allocation2 + $0x454] ss:$12 sps:$4 sm:$0xff]  }
  0x4a   :  { %1250 = vmatpush2.bf16.msra.mxu0 %v2568_v47  ;;  %v2657_v47 = vld [vmem:[#allocation2 + $0x158] ss:$12 sps:$4 sm:$0xff]  }
  0x4b   :  { %1251 = vmatprep.subr.bf16.mxu0 %v2572_v49  ;;  %1291 = vmatpush2.bf16.msra.mxu1 %v2571_v51  ;;  %v2654_v49 = vld [vmem:[#allocation2 + $0x450] ss:$12 sps:$4 sm:$0xff]   ;;  %v2658_v51 = vld [vmem:[#allocation2 + $0x98] ss:$12 sps:$4 sm:$0xff]  }
  0x4c   :  { %1292 = vmatprep.subr.bf16.mxu1 %v2575_v53  ;;  %v2662_v53 = vld [vmem:[#allocation2 + $0x140] ss:$12 sps:$4 sm:$0xff]  }
  0x4e   :  { %1252 = vmatpush2.bf16.msra.mxu0 %v2574_v54  ;;  %v2659_v54 = vld [vmem:[#allocation2 + $0x438] ss:$12 sps:$4 sm:$0xff]  }
  0x4f   :  { %1253 = vmatprep.subr.bf16.mxu0 %v2578_v55  ;;  %1293 = vmatpush2.bf16.msra.mxu1 %v2577_v56  ;;  %v2666_v55 = vld [vmem:[#allocation2 + $0x424] ss:$12 sps:$4 sm:$0xff]   ;;  %v2663_v56 = vld [vmem:[#allocation2 + $0x80] ss:$12 sps:$4 sm:$0xff]  }
  0x50   :  { %1294 = vmatprep.subr.bf16.mxu1 %v2581_v57  ;;  %v2667_v57 = vld [vmem:[#allocation2 + $0x128] ss:$12 sps:$4 sm:$0xff]  }
  0x52   :  { %1254 = vmatpush2.bf16.msra.mxu0 %v2580_v58  ;;  %v2664_v58 = vld [vmem:[#allocation2 + $0x420] ss:$12 sps:$4 sm:$0xff]  }
  0x53   :  { %1255 = vmatprep.subr.bf16.mxu0 %v2584_v59  ;;  %1295 = vmatpush2.bf16.msra.mxu1 %v2583_v60  ;;  %v2671_v59 = vld [vmem:[#allocation2 + $0x40c] ss:$12 sps:$4 sm:$0xff]   ;;  %v2668_v60 = vld [vmem:[#allocation2 + $0x68] ss:$12 sps:$4 sm:$0xff]  }
  0x54   :  { %1296 = vmatprep.subr.bf16.mxu1 %v2587_v61  ;;  %v2672_v61 = vld [vmem:[#allocation2 + $0x110] ss:$12 sps:$4 sm:$0xff]  }
  0x56   :  { %1256 = vmatpush2.bf16.msra.mxu0 %v2586_v62  ;;  %v2676_v62 = vld [vmem:[#allocation2 + $0x3f4] ss:$12 sps:$4 sm:$0xff]  }
  0x57   :  { %1257 = vmatprep.subr.bf16.mxu0 %v2590_v63  ;;  %1297 = vmatpush2.bf16.msra.mxu1 %v2589_v0  ;;  %v2673_v63 = vld [vmem:[#allocation2 + $0x50] ss:$12 sps:$4 sm:$0xff]   ;;  %v2677_v0 = vld [vmem:[#allocation2 + $0xf8] ss:$12 sps:$4 sm:$0xff]  }
  0x58   :  { %1298 = vmatprep.subr.bf16.mxu1 %v2593_v1  ;;  %v2674_v1 = vld [vmem:[#allocation2 + $0x3f0] ss:$12 sps:$4 sm:$0xff]  }
  0x5a   :  { %1258 = vmatpush2.bf16.msra.mxu0 %v2592_v2  ;;  %v2681_v2 = vld [vmem:[#allocation2 + $0x3dc] ss:$12 sps:$4 sm:$0xff]  }
  0x5b   :  { %1309 = vmatprep.subr.bf16.mxu0 %v2600_v3  ;;  %1299 = vmatpush2.bf16.msra.mxu1 %v2597_v4  ;;  %v2678_v3 = vld [vmem:[#allocation2 + $0x38] ss:$12 sps:$4 sm:$0xff]   ;;  %v2682_v4 = vld [vmem:[#allocation2 + $0xe0] ss:$12 sps:$4 sm:$0xff]  }
  0x5c   :  { %1350 = vmatprep.subr.bf16.mxu1 %v2605_v6  ;;  %v2679_v6 = vld [vmem:[#allocation2 + $0x3d8] ss:$12 sps:$4 sm:$0xff]  }
  0x5d   :  { %1260 = vmatmul.mubr.bf16.vlgmr.msra.gmra.mxu0 %v2892_v5 }
  0x5e   :  { %1310 = vmatpush1.bf16.msra.mxu0 %v2598_v7  ;;  %1301 = vmatmul.mubr.bf16.vlgmr.msra.gmra.mxu1 %v2894_v8  ;;  %v2686_v7 = vld [vmem:[#allocation2 + $0x3c4] ss:$12 sps:$4 sm:$0xff]  }
  0x5f   :  { %1311 = vmatprep.subr.bf16.mxu0 %v2608_v9  ;;  %1351 = vmatpush1.bf16.msra.mxu1 %v2603_v10  ;;  %v2683_v9 = vld [vmem:[#allocation2 + $0x20] ss:$12 sps:$4 sm:$0xff]   ;;  %v2687_v10 = vld [vmem:[#allocation2 + $0xc8] ss:$12 sps:$4 sm:$0xff]  }
  0x60   :  { %1382 = vmatprep.mubr.bf16.mxu1 %v2821_v15  ;;  %1352 = vmatprep.subr.bf16.mxu1 %v2611_v11  ;;  %v2684_v11 = vld [vmem:[#allocation2 + $0x3c0] ss:$12 sps:$4 sm:$0xff]   ;;  %v2693_v15 = vld [vmem:[#allocation2 + $0x470] ss:$12 sps:$4 sm:$0xff]  }
  0x61   :  { %1341 = vmatprep.mubr.bf16.mxu0 %v2905_v41 }
  0x62   :  { %1312 = vmatpush1.bf16.msra.mxu0 %v2606_v12  ;;  %v2691_v12 = vld [vmem:[#allocation2 + $0x2f0] ss:$12 sps:$4 sm:$0xff]  }
  0x63   :  { %1313 = vmatprep.subr.bf16.mxu0 %v2614_v13  ;;  %1353 = vmatpush1.bf16.msra.mxu1 %v2609_v14  ;;  %v2690_v13 = vld [vmem:[#allocation2 + $0x8] ss:$12 sps:$4 sm:$0xff]   ;;  %v2917_v14 = vcombine.low %v2901_v39, %v2901_v39 }
  0x64   :  { %1354 = vmatprep.subr.bf16.mxu1 %v2617_v16  ;;  %v2692_v16 = vld [vmem:[#allocation2 + $0x230] ss:$12 sps:$4 sm:$0xff]   ;;  %v2719_v39 = vld [vmem:[#allocation2 + $0x248] ss:$12 sps:$4 sm:$0xff]  }
  0x66   :  { %1314 = vmatpush1.bf16.msra.mxu0 %v2612_v17  ;;  %v2695_v17 = vld [vmem:[#allocation2 + $0x2d8] ss:$12 sps:$4 sm:$0xff]  }
  0x67   :  { %1315 = vmatprep.subr.bf16.mxu0 %v2620_v18  ;;  %1355 = vmatpush1.bf16.msra.mxu1 %v2615_v19  ;;  %v2694_v18 = vld [vmem:[#allocation2 + $0x3b0] ss:$12 sps:$4 sm:$0xff]   ;;  %v2697_v19 = vld [vmem:[#allocation2 + $0x458] ss:$12 sps:$4 sm:$0xff]  }
  0x68   :  { %1356 = vmatprep.subr.bf16.mxu1 %v2623_v20  ;;  %v2696_v20 = vld [vmem:[#allocation2 + $0x218] ss:$12 sps:$4 sm:$0xff]  }
  0x6a   :  { %1316 = vmatpush1.bf16.msra.mxu0 %v2618_v21  ;;  %v2698_v21 = vld [vmem:[#allocation2 + $0x398] ss:$12 sps:$4 sm:$0xff]  }
  0x6b   :  { %1317 = vmatprep.subr.bf16.mxu0 %v2626_v22  ;;  %1357 = vmatpush1.bf16.msra.mxu1 %v2621_v23  ;;  %v2699_v22 = vld [vmem:[#allocation2 + $0x2c0] ss:$12 sps:$4 sm:$0xff]  }
  0x6c   :  { %1358 = vmatprep.subr.bf16.mxu1 %v2629_v24  ;;  %v2701_v23 = vld [vmem:[#allocation2 + $0x440] ss:$12 sps:$4 sm:$0xff]  }
  0x6d   :  { %v2700_v24 = vld [vmem:[#allocation2 + $0x200] ss:$12 sps:$4 sm:$0xff]  }
  0x6e   :  { %1318 = vmatpush1.bf16.msra.mxu0 %v2624_v25  ;;  %v2703_v25 = vld [vmem:[#allocation2 + $0x2a8] ss:$12 sps:$4 sm:$0xff]  }
  0x6f   :  { %1319 = vmatprep.subr.bf16.mxu0 %v2632_v26  ;;  %1359 = vmatpush1.bf16.msra.mxu1 %v2627_v27  ;;  %v2702_v26 = vld [vmem:[#allocation2 + $0x380] ss:$12 sps:$4 sm:$0xff]   ;;  %v2704_v27 = vld [vmem:[#allocation2 + $0x1e8] ss:$12 sps:$4 sm:$0xff]  }
  0x70   :  { %1360 = vmatprep.subr.bf16.mxu1 %v2635_v28  ;;  %v2705_v28 = vld [vmem:[#allocation2 + $0x428] ss:$12 sps:$4 sm:$0xff]  }
  0x72   :  { %1320 = vmatpush1.bf16.msra.mxu0 %v2630_v29  ;;  %v2709_v29 = vld [vmem:[#allocation2 + $0x410] ss:$12 sps:$4 sm:$0xff]  }
  0x73   :  { %1321 = vmatprep.subr.bf16.mxu0 %v2638_v30  ;;  %1361 = vmatpush1.bf16.msra.mxu1 %v2633_v31  ;;  %v2708_v30 = vld [vmem:[#allocation2 + $0x1d0] ss:$12 sps:$4 sm:$0xff]   ;;  %v2711_v31 = vld [vmem:[#allocation2 + $0x278] ss:$12 sps:$4 sm:$0xff]  }
  0x74   :  { %1362 = vmatprep.subr.bf16.mxu1 %v2641_v32  ;;  %v2710_v32 = vld [vmem:[#allocation2 + $0x350] ss:$12 sps:$4 sm:$0xff]  }
  0x76   :  { %1322 = vmatpush1.bf16.msra.mxu0 %v2636_v33  ;;  %v2713_v33 = vld [vmem:[#allocation2 + $0x3f8] ss:$12 sps:$4 sm:$0xff]  }
  0x77   :  { %1323 = vmatprep.subr.bf16.mxu0 %v2644_v34  ;;  %1363 = vmatpush1.bf16.msra.mxu1 %v2639_v35  ;;  %v2712_v34 = vld [vmem:[#allocation2 + $0x1b8] ss:$12 sps:$4 sm:$0xff]   ;;  %v2715_v35 = vld [vmem:[#allocation2 + $0x260] ss:$12 sps:$4 sm:$0xff]  }
  0x78   :  { %1364 = vmatprep.subr.bf16.mxu1 %v2647_v37  ;;  %v2717_v37 = vld [vmem:[#allocation2 + $0x3e0] ss:$12 sps:$4 sm:$0xff]  }
  0x7a   :  { %1324 = vmatpush1.bf16.msra.mxu0 %v2642_v36  ;;  %v2714_v36 = vld [vmem:[#allocation2 + $0x338] ss:$12 sps:$4 sm:$0xff]  }
  0x7b   :  { %1325 = vmatprep.subr.bf16.mxu0 %v2650_v40  ;;  %1365 = vmatpush1.bf16.msra.mxu1 %v2645_v38  ;;  %v2716_v38 = vld [vmem:[#allocation2 + $0x1a0] ss:$12 sps:$4 sm:$0xff]  }
  0x7c   :  { %2287 = vmatprep.subr.bf16.mxu1 %v2651_v43  ;;  %v2718_v40 = vld [vmem:[#allocation2 + $0x320] ss:$12 sps:$4 sm:$0xff]   ;;  %v2722_v43 = vld [vmem:[#allocation2 + $0x308] ss:$12 sps:$4 sm:$0xff]  }
  0x7e   :  { %1326 = vmatpush2.bf16.msra.mxu0 %v2648_v42  ;;  %1383 = vmatmul.mubr.bf16.vlgmr.msra.gmra.mxu1 %v2911_v44  ;;  %v2720_v42 = vld [vmem:[#allocation2 + $0x188] ss:$12 sps:$4 sm:$0xff]  }
  0x7f   :  { %1327 = vmatprep.subr.bf16.mxu0 %v2656_v45  ;;  %2288 = vmatpush3.bf16.msra.mxu1 %v2653_v46  ;;  %v2731_v45 = vld [vmem:[#allocation4 + $0x78] sm:$0xff]  }
  0x80   :  { %1423 = vmatprep.mubr.bf16.mxu1 %v2883_v48  ;;  %2289 = vmatprep.subr.bf16.mxu1 %v2657_v47  ;;  %v2669_v48 = vld [vmem:[#allocation2 + $0x408] ss:$12 sps:$4 sm:$0xff]   ;;  %v2723_v46 = vld [vmem:[#allocation2 + $0x530] ss:$12 sps:$4 sm:$0xff]   ;;  %v2822_v47 = vmov 0.0  }
  0x82   :  { %1328 = vmatpush2.bf16.msra.mxu0 %v2654_v49  ;;  %v2732_v49 = vld [vmem:[#allocation4 + $0x38] sm:$0xff]  }
  0x83   :  { %1329 = vmatprep.subr.bf16.mxu0 %v2661_v50  ;;  %2290 = vmatpush3.bf16.msra.mxu1 %v2658_v51  ;;  %v2733_v50 = vld [vmem:[#allocation4 + $0x70] sm:$0xff]   ;;  %v2724_v51 = vld [vmem:[#allocation2 + $0x518] ss:$12 sps:$4 sm:$0xff]  }
  0x84   :  { %2291 = vmatprep.subr.bf16.mxu1 %v2662_v53  ;;  %v2734_v53 = vld [vmem:[#allocation4 + $0x30] sm:$0xff]  }
  0x86   :  { %1330 = vmatpush2.bf16.msra.mxu0 %v2659_v54  ;;  %v2735_v54 = vld [vmem:[#allocation4 + $0x68] sm:$0xff]  }
  0x87   :  { %1331 = vmatprep.subr.bf16.mxu0 %v2666_v55  ;;  %2292 = vmatpush3.bf16.msra.mxu1 %v2663_v56  ;;  %v2725_v55 = vld [vmem:[#allocation2 + $0x500] ss:$12 sps:$4 sm:$0xff]  }
  0x88   :  { %2293 = vmatprep.subr.bf16.mxu1 %v2667_v57  ;;  %v2737_v56 = vld [vmem:[#allocation4 + $0x60] sm:$0xff]   ;;  %v2726_v57 = vld [vmem:[#allocation2 + $0x4e8] ss:$12 sps:$4 sm:$0xff]  }
  0x8a   :  { %1332 = vmatpush2.bf16.msra.mxu0 %v2664_v58  ;;  %v2738_v58 = vld [vmem:[#allocation4 + $0x20] sm:$0xff]  }
  0x8b   :  { %1333 = vmatprep.subr.bf16.mxu0 %v2671_v59  ;;  %2294 = vmatpush3.bf16.msra.mxu1 %v2668_v60  ;;  %v2739_v59 = vld [vmem:[#allocation4 + $0x58] sm:$0xff]  }
  0x8c   :  { %2295 = vmatprep.subr.bf16.mxu1 %v2672_v61  ;;  %v2727_v60 = vld [vmem:[#allocation2 + $0x4d0] ss:$12 sps:$4 sm:$0xff]  }
  0x8d   :  { %v2740_v61 = vld [vmem:[#allocation4 + $0x18] sm:$0xff]  }
  0x8e   :  { %1334 = vmatpush2.bf16.msra.mxu0 %v2669_v48  ;;  %v2728_v48 = vld [vmem:[#allocation2 + $0x4b8] ss:$12 sps:$4 sm:$0xff]  }
  0x8f   :  { %1335 = vmatprep.subr.bf16.mxu0 %v2676_v62  ;;  %2296 = vmatpush3.bf16.msra.mxu1 %v2673_v63  ;;  %v2729_v62 = vld [vmem:[#allocation2 + $0x4a0] ss:$12 sps:$4 sm:$0xff]   ;;  %v2730_v63 = vld [vmem:[#allocation2 + $0x488] ss:$12 sps:$4 sm:$0xff]  }
  0x90   :  { %2297 = vmatprep.subr.bf16.mxu1 %v2677_v0  ;;  %v2741_v0 = vld [vmem:[#allocation4 + $0x50] sm:$0xff]  }
  0x92   :  { %1336 = vmatpush2.bf16.msra.mxu0 %v2674_v1  ;;  %v2742_v1 = vld [vmem:[#allocation4 + $0x10] sm:$0xff]  }
  0x93   :  { %1337 = vmatprep.subr.bf16.mxu0 %v2681_v2  ;;  %2298 = vmatpush3.bf16.msra.mxu1 %v2678_v3  ;;  %v2743_v2 = vld [vmem:[#allocation4 + $0x48] sm:$0xff]  }
  0x94   :  { %2299 = vmatprep.subr.bf16.mxu1 %v2682_v4  ;;  %v2744_v3 = vld [vmem:[#allocation4 + $0x8] sm:$0xff]   ;;  %v2745_v4 = vld [vmem:[#allocation4 + $0x40] sm:$0xff]  }
  0x96   :  { %1338 = vmatpush2.bf16.msra.mxu0 %v2679_v6  ;;  %v2746_v6 = vld [vmem:[#allocation4] sm:$0xff]  }
  0x97   :  { %1339 = vmatprep.subr.bf16.mxu0 %v2686_v7  ;;  %2300 = vmatpush3.bf16.msra.mxu1 %v2683_v9  ;;  %v2747_v7 = vld [vmem:[#allocation4 + $0xb8] sm:$0xff]   ;;  %v2748_v9 = vld [vmem:[#allocation4 + $0xb0] sm:$0xff]  }
  0x98   :  { %2301 = vmatprep.subr.bf16.mxu1 %v2687_v10  ;;  %v2750_v10 = vld [vmem:[#allocation4 + $0xa0] sm:$0xff]  }
  0x9a   :  { %1340 = vmatpush2.bf16.msra.mxu0 %v2684_v11  ;;  %v2751_v11 = vld [vmem:[#allocation4 + $0x98] sm:$0xff]  }
  0x9b   :  { %2309 = vmatprep.subr.bf16.mxu0 %v2691_v12  ;;  %2302 = vmatpush3.bf16.msra.mxu1 %v2690_v13  ;;  %v2752_v12 = vld [vmem:[#allocation4 + $0x90] sm:$0xff]   ;;  %v2753_v13 = vld [vmem:[#allocation4 + $0x88] sm:$0xff]  }
  0x9c   :  { %2331 = vmatprep.subr.bf16.mxu1 %v2693_v15 }
  0x9d   :  { %1342 = vmatmul.mubr.bf16.vlgmr.msra.gmra.mxu0 %v2917_v14 }
  0x9e   :  { %2310 = vmatpush3.bf16.msra.mxu0 %v2692_v16  ;;  %1463 = vmatprep.mubr.bf16.mxu0 %v2889_v52  ;;  %v2706_v52 = vld [vmem:[#allocation2 + $0x368] ss:$12 sps:$4 sm:$0xff]  }
  0x9f   :  { %1424 = vmatmul.mubr.bf16.vlgmr.msra.gmra.mxu1 %v2892_v5  ;;  %2311 = vmatprep.subr.bf16.mxu0 %v2695_v17  ;;  %v2707_v5 = vld [vmem:[#allocation2 + $0x290] ss:$12 sps:$4 sm:$0xff]   ;;  %v2754_v17 = vld [vmem:[#allocation4 + $0x80] sm:$0xff]  }
  0xa0   :  { %2332 = vmatpush3.bf16.msra.mxu1 %v2694_v18  ;;  %1503 = vmatprep.mubr.bf16.mxu1 %v2905_v41  ;;  %v2721_v41 = vld [vmem:[#allocation2 + $0x3c8] ss:$12 sps:$4 sm:$0xff]  }
  0xa1   :  { %2333 = vmatprep.subr.bf16.mxu1 %v2697_v19 }
  0xa2   :  { %2312 = vmatpush3.bf16.msra.mxu0 %v2696_v20 }
  0xa3   :  { %2313 = vmatprep.subr.bf16.mxu0 %v2699_v22 }
  0xa4   :  { %2334 = vmatpush3.bf16.msra.mxu1 %v2698_v21 }
  0xa5   :  { %2335 = vmatprep.subr.bf16.mxu1 %v2701_v23 }
  0xa6   :  { %2314 = vmatpush3.bf16.msra.mxu0 %v2700_v24 }
  0xa7   :  { %2315 = vmatprep.subr.bf16.mxu0 %v2703_v25 }
  0xa8   :  { %2336 = vmatpush3.bf16.msra.mxu1 %v2702_v26 }
  0xa9   :  { %2337 = vmatprep.subr.bf16.mxu1 %v2705_v28 }
  0xaa   :  { %2316 = vmatpush3.bf16.msra.mxu0 %v2704_v27  ;;  %v291_v27 = vlaneseq }
  0xab   :  { %2317 = vmatprep.subr.bf16.mxu0 %v2707_v5  ;;  %v289_v5 = vld [vmem:[%s3031_s2] sm:$0x7] }
  0xac   :  { %2338 = vmatpush3.bf16.msra.mxu1 %v2706_v52  ;;  %v292_v28 = vshrl.u32 %v291_v27, 7  ;;  %v2768_v27 = vld [vmem:[%s3036_s7 + $0x10] sm:$0xff]  }
  0xad   :  { %2339 = vmatprep.subr.bf16.mxu1 %v2709_v29 }
  0xae   :  { %2318 = vmatpush3.bf16.msra.mxu0 %v2708_v30  ;;  %v293_v52 = vsub.s32 0, %v292_v28  ;;  %v297_v29 = vsub.s32 1, %v292_v28 }
  0xaf   :  { %2319 = vmatprep.subr.bf16.mxu0 %v2711_v31 }
  0xb0   :  { %2340 = vmatpush3.bf16.msra.mxu1 %v2710_v32  ;;  %v294_v30 = vrot.slane %v289_v5, %v293_v52  ;;  %v298_v31 = vrot.slane %v289_v5, %v297_v29 }
  0xb1   :  { %2341 = vmatprep.subr.bf16.mxu1 %v2713_v33 }
  0xb2   :  { %2320 = vmatpush3.bf16.msra.mxu0 %v2712_v34 }
  0xb3   :  { %2321 = vmatprep.subr.bf16.mxu0 %v2715_v35 }
  0xb4   :  { %2342 = vmatpush3.bf16.msra.mxu1 %v2714_v36 }
  0xb5   :  { %2343 = vmatprep.subr.bf16.mxu1 %v2717_v37 }
  0xb6   :  { %2322 = vmatpush3.bf16.msra.mxu0 %v2716_v38 }
  0xb7   :  { %2323 = vmatprep.subr.bf16.mxu0 %v2719_v39 }
  0xb8   :  { %2344 = vmatpush3.bf16.msra.mxu1 %v2718_v40 }
  0xb9   :  { %2345 = vmatprep.subr.bf16.mxu1 %v2721_v41 }
  0xba   :  { %2324 = vmatpush3.bf16.msra.mxu0 %v2720_v42 }
  0xbb   :  { %2411 = vmatprep.subr.bf16.mxu0 %v2822_v47 }
  0xbc   :  { %2346 = vmatpush3.bf16.msra.mxu1 %v2722_v43 }
  0xbd   :  { %1464 = vmatmul.mubr.bf16.vlgmr.msra.gmra.mxu0 %v2894_v8  ;;  %2362 = vmatprep.subr.bf16.mxu1 %v2731_v45  ;;  %v2736_v8 = vld [vmem:[#allocation4 + $0x28] sm:$0xff]  }
  0xbe   :  { %2412 = vmatpush3.bf16.msra.mxu0 %v2723_v46  ;;  %2427 = vmatprep.mubr.msk.bf16.mxu0 %vm2823_vm0, %v2822_v47 }
  0xbf   :  { %1504 = vmatmul.mubr.bf16.vlgmr.msra.gmra.mxu1 %v2917_v14  ;;  %2413 = vmatprep.subr.bf16.mxu0 %v2822_v47 }
  0xc0   :  { %2363 = vmatpush3.bf16.msra.mxu1 %v2732_v49 }
  0xc1   :  { %2364 = vmatprep.subr.bf16.mxu1 %v2733_v50 }
  0xc2   :  { %2414 = vmatpush3.bf16.msra.mxu0 %v2724_v51 }
  0xc3   :  { %2415 = vmatprep.subr.bf16.mxu0 %v2822_v47 }
  0xc4   :  { %2365 = vmatpush3.bf16.msra.mxu1 %v2734_v53 }
  0xc5   :  { %2366 = vmatprep.subr.bf16.mxu1 %v2735_v54 }
  0xc6   :  { %2416 = vmatpush3.bf16.msra.mxu0 %v2725_v55 }
  0xc7   :  { %2417 = vmatprep.subr.bf16.mxu0 %v2822_v47 }
  0xc8   :  { %2367 = vmatpush3.bf16.msra.mxu1 %v2736_v8 }
  0xc9   :  { %2368 = vmatprep.subr.bf16.mxu1 %v2737_v56 }
  0xca   :  { %2418 = vmatpush3.bf16.msra.mxu0 %v2726_v57 }
  0xcb   :  { %2419 = vmatprep.subr.bf16.mxu0 %v2822_v47 }
  0xcc   :  { %2369 = vmatpush3.bf16.msra.mxu1 %v2738_v58 }
  0xcd   :  { %2370 = vmatprep.subr.bf16.mxu1 %v2739_v59 }
  0xce   :  { %2420 = vmatpush3.bf16.msra.mxu0 %v2727_v60 }
  0xcf   :  { %2421 = vmatprep.subr.bf16.mxu0 %v2822_v47 }
  0xd0   :  { %2371 = vmatpush3.bf16.msra.mxu1 %v2740_v61 }
  0xd1   :  { %2372 = vmatprep.subr.bf16.mxu1 %v2741_v0 }
  0xd2   :  { %2422 = vmatpush3.bf16.msra.mxu0 %v2728_v48 }
  0xd3   :  { %2423 = vmatprep.subr.bf16.mxu0 %v2822_v47 }
  0xd4   :  { %2373 = vmatpush3.bf16.msra.mxu1 %v2742_v1 }
  0xd5   :  { %2374 = vmatprep.subr.bf16.mxu1 %v2743_v2 }
  0xd6   :  { %2424 = vmatpush3.bf16.msra.mxu0 %v2729_v62  ;;  %v301_v62 = vsub.s32 2, %v292_v28 }
  0xd7   :  { %2425 = vmatprep.subr.bf16.mxu0 %v2822_v47 }
  0xd8   :  { %2375 = vmatpush3.bf16.msra.mxu1 %v2744_v3 }
  0xd9   :  { %2376 = vmatprep.subr.bf16.mxu1 %v2745_v4 }
  0xda   :  { %2426 = vmatpush3.bf16.msra.mxu0 %v2730_v63  ;;  %v302_v63 = vrot.slane %v289_v5, %v301_v62 }
  0xdb   :  { %2431 = vmatprep.subr.bf16.mxu0 %v2822_v47 }
  0xdc   :  { %2377 = vmatpush3.bf16.msra.mxu1 %v2746_v6 }
  0xdd   :  { %2428 = vmatmul.mubr.bf16.vlgmr.msra.gmra.mxu0 %v2911_v44  ;;  %2451 = vmatprep.subr.bf16.mxu1 %v2822_v47  ;;  %v2749_v44 = vld [vmem:[#allocation4 + $0xa8] sm:$0xff]  }
  0xde   :  { %2447 = vmatprep.mubr.msk.bf16.mxu0 %vm2823_vm0, %v2822_v47  ;;  %2432 = vmatpush3.bf16.msra.mxu0 %v2747_v7 }
  0xdf   :  { %2433 = vmatprep.subr.bf16.mxu0 %v2822_v47 }
  0xe2   :  { %2434 = vmatpush3.bf16.msra.mxu0 %v2748_v9 }
  0xe3   :  { %2435 = vmatprep.subr.bf16.mxu0 %v2822_v47 }
  0xe6   :  { %2436 = vmatpush3.bf16.msra.mxu0 %v2749_v44 }
  0xe7   :  { %2437 = vmatprep.subr.bf16.mxu0 %v2822_v47 }
  0xea   :  { %2438 = vmatpush3.bf16.msra.mxu0 %v2750_v10 }
  0xeb   :  { %2439 = vmatprep.subr.bf16.mxu0 %v2822_v47 }
  0xee   :  { %2440 = vmatpush3.bf16.msra.mxu0 %v2751_v11 }
  0xef   :  { %2441 = vmatprep.subr.bf16.mxu0 %v2822_v47 }
  0xf2   :  { %2442 = vmatpush3.bf16.msra.mxu0 %v2752_v12 }
  0xf3   :  { %2443 = vmatprep.subr.bf16.mxu0 %v2822_v47 }
  0xf6   :  { %2444 = vmatpush3.bf16.msra.mxu0 %v2753_v13 }
  0xf7   :  { %2445 = vmatprep.subr.bf16.mxu0 %v2822_v47 }
  0xfa   :  { %2446 = vmatpush3.bf16.msra.mxu0 %v2754_v17  ;;  %v2758_v17 = vld [vmem:[%s3034_s5 + $0x20] sm:$0xff]  }
  0xfb   :  { %2471 = vmatprep.subr.bf16.mxu0 %v2822_v47 }
 0x11d   :  { %v1261_v14 = vpop.f32.mrf.mxu0 }
 0x11e   :  { %v1302_v16 = vpop.f32.mrf.mxu1  ;;  %v1262_v32 = vadd.f32 %v1261_v14, %v294_v30  ;;  %v2755_v14 = vld [vmem:[%s3034_s5 + $0x38] sm:$0xff]  }
 0x11f   :  { %v1263_v15 = vpop.f32.mrf.mxu0 }
 0x120   :  { %v1304_v19 = vpop.f32.mrf.mxu1  ;;  %v1264_v33 = vadd.f32 %v1263_v15, %v298_v31  ;;  %v1303_v34 = vadd.f32 %v1302_v16, %v1262_v32  ;;  %v2756_v15 = vld [vmem:[%s3034_s5 + $0x30] sm:$0xff]   ;;  %v2757_v16 = vld [vmem:[%s3034_s5 + $0x28] sm:$0xff]   ;;  %v2244_v31 = vld [vmem:[%s3033_s4] ss:$0 sm:$0xff] }
 0x121   :  { %v1265_v18 = vpop.f32.mrf.mxu0 }
 0x122   :  { %v1306_v21 = vpop.f32.mrf.mxu1  ;;  %v1305_v36 = vadd.f32 %v1304_v19, %v1264_v33  ;;  %v2759_v18 = vld [vmem:[%s3034_s5 + $0x18] sm:$0xff]   ;;  %v2760_v19 = vld [vmem:[%s3034_s5 + $0x10] sm:$0xff]  }
 0x123   :  { %v1266_v20 = vpop.f32.mrf.mxu0  ;;  %v2762_v21 = vld [vmem:[%s3034_s5] sm:$0xff]  }
 0x124   :  { %v1307_v22 = vpop.f32.mrf.mxu1  ;;  %v2761_v20 = vld [vmem:[%s3034_s5 + $0x8] sm:$0xff]  }
 0x125   :  { %v2763_v22 = vld [vmem:[%s3036_s7 + $0x38] sm:$0xff]  }
 0x13e   :  { %v1384_v23 = vpop.f32.mrf.mxu1 }
 0x140   :  { %v1386_v24 = vpop.f32.mrf.mxu1 }
 0x142   :  { %v1388_v25 = vpop.f32.mrf.mxu1 }
 0x143   :  { %v2766_v25 = vld [vmem:[%s3036_s7 + $0x20] sm:$0xff]  }
 0x144   :  { %v1389_v26 = vpop.f32.mrf.mxu1 }
 0x145   :  { %v2767_v26 = vld [vmem:[%s3036_s7 + $0x18] sm:$0xff]  }
 0x15d   :  { %v1343_v35 = vpop.f32.mrf.mxu0 }
 0x15e   :  { %v1344_v37 = vadd.f32 %v1343_v35, %v1303_v34 }
 0x15f   :  { %v1345_v38 = vpop.f32.mrf.mxu0  ;;  %v2303_v39 = vpop.f32.mrf.mxu1 }
 0x160   :  { %v1385_v40 = vadd.f32 %v1384_v23, %v1344_v37  ;;  %v1346_v41 = vadd.f32 %v1345_v38, %v1305_v36  ;;  %v2764_v23 = vld [vmem:[%s3036_s7 + $0x30] sm:$0xff]  }
 0x161   :  { %v1347_v42 = vpop.f32.mrf.mxu0  ;;  %v2304_v43 = vpop.f32.mrf.mxu1 }
 0x162   :  { %v1387_v45 = vadd.f32 %v1386_v24, %v1346_v41  ;;  %v1551_v46 = vmax.f32 %v1385_v40, 0.0  ;;  %v2305_v0 = vadd.f32 %v2304_v43, %v2303_v39  ;;  %v2765_v24 = vld [vmem:[%s3036_s7 + $0x28] sm:$0xff]   ;;  %v2770_v41 = vld [vmem:[%s3036_s7] sm:$0xff]  }
 0x163   :  { %v1348_v49 = vpop.f32.mrf.mxu0  ;;  %v2306_v50 = vpop.f32.mrf.mxu1  ;;  %v2769_v40 = vld [vmem:[%s3036_s7 + $0x8] sm:$0xff]   ;;  %v2269_v42 = vld [vmem:[%s3035_s6] ss:$0 sm:$0xff] }
 0x164   :  { %v1552_v51 = vmax.f32 %v1387_v45, 0.0  ;;  %v1554_v55 = vpack.c.bf16 %v1551_v46, %v1551_v46  ;;  %v1426_v2 = vadd.f32 %v2305_v0, %v302_v63 }
 0x165   :  { %v2307_v53 = vpop.f32.mrf.mxu1 }
 0x166   :  { %v1555_v54 = vpack.c.bf16 %v1552_v51, %v1552_v51 }
 0x168   :  { %1788 = vmatprep.mubr.bf16.mxu1 %v1555_v54 }
 0x169   :  { %1789 = vmatmul.mubr.bf16.vlgmr.msra.gmra.mxu1 %v1554_v55 }
 0x16a   :  { %2467 = vmatprep.mubr.msk.bf16.mxu1 %vm2823_vm0, %v2822_v47  ;;  %2452 = vmatpush3.bf16.msra.mxu1 %v2755_v14 }
 0x16b   :  { %2453 = vmatprep.subr.bf16.mxu1 %v2822_v47 }
 0x16e   :  { %2454 = vmatpush3.bf16.msra.mxu1 %v2756_v15 }
 0x16f   :  { %2455 = vmatprep.subr.bf16.mxu1 %v2822_v47 }
 0x172   :  { %2456 = vmatpush3.bf16.msra.mxu1 %v2757_v16 }
 0x173   :  { %2457 = vmatprep.subr.bf16.mxu1 %v2822_v47 }
 0x176   :  { %2458 = vmatpush3.bf16.msra.mxu1 %v2758_v17 }
 0x177   :  { %2459 = vmatprep.subr.bf16.mxu1 %v2822_v47 }
 0x17a   :  { %2460 = vmatpush3.bf16.msra.mxu1 %v2759_v18 }
 0x17b   :  { %2461 = vmatprep.subr.bf16.mxu1 %v2822_v47 }
 0x17d   :  { %v2325_v8 = vpop.f32.mrf.mxu0 }
 0x17e   :  { %2462 = vmatpush3.bf16.msra.mxu1 %v2760_v19 }
 0x17f   :  { %v2326_v56 = vpop.f32.mrf.mxu0  ;;  %v2347_v57 = vpop.f32.mrf.mxu1  ;;  %2463 = vmatprep.subr.bf16.mxu1 %v2822_v47 }
 0x180   :  { %v2327_v1 = vadd.f32 %v2326_v56, %v2325_v8 }
 0x181   :  { %v2328_v58 = vpop.f32.mrf.mxu0  ;;  %v2348_v59 = vpop.f32.mrf.mxu1 }
 0x182   :  { %v1466_v3 = vadd.f32 %v2327_v1, %v1426_v2  ;;  %v2349_v4 = vadd.f32 %v2348_v59, %v2347_v57  ;;  %2464 = vmatpush3.bf16.msra.mxu1 %v2761_v20 }
 0x183   :  { %v2329_v60 = vpop.f32.mrf.mxu0  ;;  %v2350_v61 = vpop.f32.mrf.mxu1  ;;  %2465 = vmatprep.subr.bf16.mxu1 %v2822_v47 }
 0x184   :  { %v1506_v6 = vadd.f32 %v2349_v4, %v1466_v3 }
 0x185   :  { %v2351_v48 = vpop.f32.mrf.mxu1 }
 0x186   :  { %2466 = vmatpush3.bf16.msra.mxu1 %v2762_v21 }
 0x19d   :  { %v1545_v7 = vpop.f32.mrf.mxu0 }
 0x19e   :  { %v1546_v9 = vadd.f32 %v1545_v7, %v1506_v6 }
 0x19f   :  { %v2429_v44 = vpop.f32.mrf.mxu0 }
 0x1a0   :  { %v1553_v10 = vmax.f32 %v1546_v9, 0.0 }
 0x1a1   :  { %v1548_v11 = vpop.f32.mrf.mxu0 }
 0x1a2   :  { %v1556_v12 = vpack.c.bf16 %v1553_v10, %v1553_v10 }
 0x1a3   :  { %v2430_v13 = vpop.f32.mrf.mxu0 }
 0x1a4   :  { %2448 = vmatmul.mubr.bf16.vlgmr.msra.gmra.mxu0 %v1556_v12 }
 0x1a5   :  { %2487 = vmatprep.mubr.msk.bf16.mxu0 %vm2823_vm0, %v2822_v47  ;;  %2472 = vmatpush3.bf16.msra.mxu0 %v2763_v22 }
 0x1a6   :  { %2473 = vmatprep.subr.bf16.mxu0 %v2822_v47 }
 0x1a9   :  { %2474 = vmatpush3.bf16.msra.mxu0 %v2764_v23 }
 0x1aa   :  { %2475 = vmatprep.subr.bf16.mxu0 %v2822_v47 }
 0x1ad   :  { %2476 = vmatpush3.bf16.msra.mxu0 %v2765_v24 }
 0x1ae   :  { %2477 = vmatprep.subr.bf16.mxu0 %v2822_v47 }
 0x1b1   :  { %2478 = vmatpush3.bf16.msra.mxu0 %v2766_v25 }
 0x1b2   :  { %2479 = vmatprep.subr.bf16.mxu0 %v2822_v47 }
 0x1b5   :  { %2480 = vmatpush3.bf16.msra.mxu0 %v2767_v26 }
 0x1b6   :  { %2481 = vmatprep.subr.bf16.mxu0 %v2822_v47 }
 0x1b9   :  { %2482 = vmatpush3.bf16.msra.mxu0 %v2768_v27 }
 0x1ba   :  { %2483 = vmatprep.subr.bf16.mxu0 %v2822_v47 }
 0x1bd   :  { %2484 = vmatpush3.bf16.msra.mxu0 %v2769_v40 }
 0x1be   :  { %2485 = vmatprep.subr.bf16.mxu0 %v2822_v47  ;;  %v2278_v47 = vld [vmem:[%s3037_s8] ss:$0 sm:$0xff] }
 0x1c1   :  { %2486 = vmatpush3.bf16.msra.mxu0 %v2770_v41 }
 0x229   :  { %v2378_v28 = vpop.f32.mrf.mxu1 }
 0x22b   :  { %v2379_v52 = vpop.f32.mrf.mxu1 }
 0x22c   :  { %v2380_v30 = vadd.f32 %v2379_v52, %v2378_v28 }
 0x22d   :  { %v2381_v5 = vpop.f32.mrf.mxu1 }
 0x22e   :  { %v1791_v32 = vadd.f32 %v2380_v30, %v2244_v31 }
 0x22f   :  { %v2382_v29 = vpop.f32.mrf.mxu1 }
 0x264   :  { %v1830_v33 = vpop.f32.mrf.mxu0 }
 0x265   :  { %v1831_v34 = vadd.f32 %v1830_v33, %v1791_v32 }
 0x266   :  { %v2449_v35 = vpop.f32.mrf.mxu0 }
 0x267   :  { %v1836_v36 = vmax.f32 %v1831_v34, 0.0 }
 0x268   :  { %v1833_v37 = vpop.f32.mrf.mxu0 }
 0x269   :  { %v1837_v38 = vpack.c.bf16 %v1836_v36, %v1836_v36 }
 0x26a   :  { %v2450_v39 = vpop.f32.mrf.mxu0 }
 0x26b   :  { %2468 = vmatmul.mubr.bf16.vlgmr.msra.gmra.mxu1 %v1837_v38 }
 0x32b   :  { %v1943_v43 = vpop.f32.mrf.mxu1 }
 0x32c   :  { %v1944_v45 = vadd.f32 %v2269_v42, %v1943_v43 }
 0x32d   :  { %v2469_v46 = vpop.f32.mrf.mxu1 }
 0x32e   :  { %v1949_v49 = vmax.f32 %v1944_v45, 0.0 }
 0x32f   :  { %v1946_v50 = vpop.f32.mrf.mxu1 }
 0x330   :  { %v1950_v51 = vpack.c.bf16 %v1949_v49, %v1949_v49 }
 0x331   :  { %v2470_v53 = vpop.f32.mrf.mxu1 }
 0x332   :  { %2488 = vmatmul.mubr.bf16.vlgmr.msra.gmra.mxu0 %v1950_v51 }
 0x3f2   :  { %v2056_v54 = vpop.f32.mrf.mxu0 }
 0x3f3   :  { %v2057_v55 = vadd.f32 %v2278_v47, %v2056_v54 }
 0x3f4   :  { %v2489_v8 = vpop.f32.mrf.mxu0 }
 0x3f5   :  { %2062 = vst [vmem:[%s3038_s9] sm:$0xff] %v2057_v55 }
 0x3f6   :  { %v2059_v56 = vpop.f32.mrf.mxu0 }
 0x3f8   :  { %v2490_v57 = vpop.f32.mrf.mxu0 }
 0x3f9   :  { %2067 = vsyncpa [#allocation3], 1 }
 0x3fa   :  { %2068 = vsyncpa [#allocation5], 1 }

</bundles_post_ra>
